<compile_context>
chip_gen: v6e
topology: v6e:2x2x1
jax: 0.10.0
libtpu: 0.0.40
codegen_flags: <defaults>
</compile_context>

<pallas_src>
import jax
import jax.numpy as jnp
from jax import lax
from jax.experimental import pallas as pl
from jax.experimental.pallas import tpu as pltpu


def _round_up(n, m):
    return ((n + m - 1) // m) * m


def _encoder_kernel(x_ref, w1_ref, b1_ref, w2_ref, b2_ref, out_ref):
    # Layer 1: x (TB, D) contracted with W1 (H, D) on D -> (TB, H); f32 MXU accumulate.
    h = lax.dot_general(
        x_ref[...], w1_ref[...],
        dimension_numbers=(((1,), (1,)), ((), ())),
        preferred_element_type=jnp.float32)
    h = jnp.maximum(h + b1_ref[...], 0.0)            # f32 bias + ReLU epilogue

    # Layer 2: h (TB, H) contracted with W2 (Ep, H) on H -> (TB, Ep); f32 accumulate.
    # (h is cast to the weight/compute dtype for the MXU; accumulation stays f32.)
    o = lax.dot_general(
        h.astype(w2_ref.dtype), w2_ref[...],
        dimension_numbers=(((1,), (1,)), ((), ())),
        preferred_element_type=jnp.float32)
    o = jnp.maximum(o + b2_ref[...], 0.0)
    out_ref[...] = o.astype(out_ref.dtype)


def _pick_batch_tile(B, D, H, Ep, in_bytes, out_bytes,
                     max_tile=512, budget_bytes=40 * 1024 * 1024):
    """Largest batch tile (multiple of 8) whose double-buffered working set fits."""
    resident = (D * H + Ep * H) * in_bytes + (H + Ep) * 4   # weights + f32 biases
    tb = min(max_tile, _round_up(B, 8))
    while tb > 8:
        need = (resident
                + 2 * tb * D * in_bytes            # double-buffered x tile
                + 2 * tb * Ep * out_bytes          # double-buffered out tile
                + tb * max(H, Ep) * 4)             # f32 intermediates
        if need <= budget_bytes:
            break
        tb = max(8, (tb // 2) // 8 * 8)
    return max(8, tb)


def encoder_forward(x, w1, b1, w2, b2, *, block_b=512, compute_dtype=None):
    """x: (B, D); w1: (H, D); b1: (H,); w2: (E, H); b2: (E,)  (PyTorch layout).

    compute_dtype: dtype fed to the MXU (e.g. jnp.bfloat16); accumulation is f32.
    """
    B, D = x.shape
    H, D2 = w1.shape
    E, H2 = w2.shape
    assert D == D2 and H == H2

    out_dtype = x.dtype
    compute_dtype = jnp.dtype(compute_dtype) if compute_dtype is not None else x.dtype
    in_bytes = compute_dtype.itemsize
    out_bytes = jnp.dtype(out_dtype).itemsize

    # Lane-dense output: pad E up to a multiple of 128. Zero W2 rows + zero bias
    # make the padded columns ReLU(0) = 0; they are sliced off after the kernel.
    # (Under jit with static weights these pads constant-fold / fuse.)
    Ep = _round_up(E, 128)
    if Ep != E:
        w2 = jnp.pad(w2, ((0, Ep - E), (0, 0)))
        b2 = jnp.pad(b2, (0, Ep - E))

    # Batch tile (multiple of 8 sublanes), sized for the VMEM budget.
    TB = _pick_batch_tile(B, D, H, Ep, in_bytes, out_bytes, max_tile=block_b)
    Bp = _round_up(B, TB)
    if Bp != B:
        x = jnp.pad(x, ((0, Bp - B), (0, 0)))

    x_c = x.astype(compute_dtype)
    w1_c = w1.astype(compute_dtype)
    w2_c = w2.astype(compute_dtype)
    b1_2d = b1.reshape(1, H).astype(jnp.float32)
    b2_2d = b2.reshape(1, Ep).astype(jnp.float32)

    grid = (Bp // TB,)

    cost = pl.CostEstimate(
        flops=2 * Bp * D * H + 2 * Bp * H * Ep,
        transcendentals=0,
        bytes_accessed=(x_c.size * in_bytes
                        + w1_c.size * in_bytes
                        + w2_c.size * in_bytes
                        + (H + Ep) * 4
                        + Bp * Ep * out_bytes))

    out = pl.pallas_call(
        _encoder_kernel,
        out_shape=jax.ShapeDtypeStruct((Bp, Ep), out_dtype),
        grid_spec=pltpu.PrefetchScalarGridSpec(
            num_scalar_prefetch=0,
            grid=grid,
            in_specs=[
                pl.BlockSpec((TB, D), lambda i: (i, 0)),    # x tile: pipelined over batch
                pl.BlockSpec((H, D), lambda i: (0, 0)),     # W1: VMEM-resident
                pl.BlockSpec((1, H), lambda i: (0, 0)),     # b1: VMEM-resident
                pl.BlockSpec((Ep, H), lambda i: (0, 0)),    # W2: VMEM-resident
                pl.BlockSpec((1, Ep), lambda i: (0, 0)),    # b2: VMEM-resident
            ],
            out_specs=pl.BlockSpec((TB, Ep), lambda i: (i, 0)),
        ),
        compiler_params=pltpu.CompilerParams(
            dimension_semantics=("parallel",),              # 2 TCs on v7x; neutral elsewhere
            vmem_limit_bytes=48 * 1024 * 1024),
        cost_estimate=cost,
    )(x_c, w1_c, b1_2d, w2_c, b2_2d)

    return out[:B, :E]


def _init_linear(key, out_features, in_features, dtype=jnp.float32):
    """Deterministic init mimicking nn.Linear's uniform(-1/sqrt(fan_in), 1/sqrt(fan_in))."""
    kw, kb = jax.random.split(key)
    bound = 1.0 / jnp.sqrt(jnp.asarray(in_features, dtype))
    w = jax.random.uniform(kw, (out_features, in_features), dtype,
                           minval=-bound, maxval=bound)
    b = jax.random.uniform(kb, (out_features,), dtype,
                           minval=-bound, maxval=bound)
    return w, b


if __name__ == "__main__":
    batch = 8
    input_size = 32
    n_embeddings = 8
    hidden = input_size // 2

    key = jax.random.PRNGKey(0)
    kx, k1, k2 = jax.random.split(key, 3)

    x = jax.random.normal(kx, (batch, input_size), jnp.float32)
    w1, b1 = _init_linear(k1, hidden, input_size)
    w2, b2 = _init_linear(k2, n_embeddings, hidden)

    # Reference = plain JAX with the same math as the PyTorch forward.
    ref = jnp.maximum(jnp.maximum(x @ w1.T + b1, 0.0) @ w2.T + b2, 0.0)

    # f32 MXU operands, tight tolerance.
    out = jax.block_until_ready(encoder_forward(x, w1, b1, w2, b2))
    assert out.shape == (batch, n_embeddings)
    assert jnp.allclose(out, ref, atol=1e-5, rtol=1e-5)

    # bf16 MXU operands / f32 accumulation (loose tolerance vs the f32 reference).
    out_bf16 = jax.block_until_ready(
        encoder_forward(x, w1, b1, w2, b2, compute_dtype=jnp.bfloat16))
    assert out_bf16.shape == (batch, n_embeddings)
    assert jnp.allclose(out_bf16, ref, atol=1e-1, rtol=1e-1)

    # Ragged batch exercising multi-step batch tiling + padding (3 tiles of 8 rows).
    x_ragged = jax.random.normal(kx, (20, input_size), jnp.float32)
    ref_ragged = jnp.maximum(
        jnp.maximum(x_ragged @ w1.T + b1, 0.0) @ w2.T + b2, 0.0)
    out_ragged = jax.block_until_ready(
        encoder_forward(x_ragged, w1, b1, w2, b2, block_b=8))
    assert out_ragged.shape == (20, n_embeddings)
    assert jnp.allclose(out_ragged, ref_ragged, atol=1e-5, rtol=1e-5)

    print("KERNEL_OK")
</pallas_src>

<mosaic_0001>
module attributes {stable_mosaic.version = 11 : i64} {
  func.func @_encoder_kernel(%arg0: i32, %arg1: memref<8x32xf32, #tpu.memory_space<vmem>>, %arg2: memref<16x32xf32, #tpu.memory_space<vmem>>, %arg3: memref<1x16xf32, #tpu.memory_space<vmem>>, %arg4: memref<128x16xf32, #tpu.memory_space<vmem>>, %arg5: memref<1x128xf32, #tpu.memory_space<vmem>>, %arg6: memref<8x128xf32, #tpu.memory_space<vmem>>) attributes {dimension_semantics = [#tpu.dimension_semantics<parallel>], iteration_bounds = array<i64: 1>, scalar_prefetch = 0 : i64, scratch_operands = 0 : i64, tpu.core_type = #tpu.core_type<tc>, window_params = [{transform_indices = @transform_0, window_bounds = array<i64: 8, 32>}, {pipeline_mode = #tpu.pipeline_mode<synchronous>, transform_indices = @transform_1, window_bounds = array<i64: 16, 32>}, {pipeline_mode = #tpu.pipeline_mode<synchronous>, transform_indices = @transform_2, window_bounds = array<i64: 1, 16>}, {pipeline_mode = #tpu.pipeline_mode<synchronous>, transform_indices = @transform_3, window_bounds = array<i64: 128, 16>}, {pipeline_mode = #tpu.pipeline_mode<synchronous>, transform_indices = @transform_4, window_bounds = array<i64: 1, 128>}, {transform_indices = @transform_5, window_bounds = array<i64: 8, 128>}]} {
    %c0 = arith.constant 0 : index
    %c0_0 = arith.constant 0 : index
    %0 = vector.load %arg1[%c0, %c0_0] : memref<8x32xf32, #tpu.memory_space<vmem>>, vector<8x32xf32>
    %c0_1 = arith.constant 0 : index
    %c0_2 = arith.constant 0 : index
    %1 = vector.load %arg2[%c0_1, %c0_2] : memref<16x32xf32, #tpu.memory_space<vmem>>, vector<16x32xf32>
    %cst = arith.constant dense<0.000000e+00> : vector<8x16xf32>
    %2 = tpu.matmul %0, %1, %cst {dimension_numbers = #tpu.dot_dimension_numbers<[1], [1], [0], [0], [0, 0, 1, 0], [], []>} : vector<8x32xf32>, vector<16x32xf32>, vector<8x16xf32> -> vector<8x16xf32>
    %c0_3 = arith.constant 0 : index
    %c0_4 = arith.constant 0 : index
    %3 = vector.load %arg3[%c0_3, %c0_4] : memref<1x16xf32, #tpu.memory_space<vmem>>, vector<1x16xf32>
    %4 = vector.broadcast %3 : vector<1x16xf32> to vector<8x16xf32>
    %5 = arith.addf %2, %4 : vector<8x16xf32>
    %cst_5 = arith.constant 0.000000e+00 : f32
    %6 = vector.broadcast %cst_5 : f32 to vector<8x16xf32>
    %7 = arith.maximumf %5, %6 : vector<8x16xf32>
    %c0_6 = arith.constant 0 : index
    %c0_7 = arith.constant 0 : index
    %8 = vector.load %arg4[%c0_6, %c0_7] : memref<128x16xf32, #tpu.memory_space<vmem>>, vector<128x16xf32>
    %cst_8 = arith.constant dense<0.000000e+00> : vector<8x128xf32>
    %9 = tpu.matmul %7, %8, %cst_8 {dimension_numbers = #tpu.dot_dimension_numbers<[1], [1], [0], [0], [0, 0, 1, 0], [], []>} : vector<8x16xf32>, vector<128x16xf32>, vector<8x128xf32> -> vector<8x128xf32>
    %c0_9 = arith.constant 0 : index
    %c0_10 = arith.constant 0 : index
    %10 = vector.load %arg5[%c0_9, %c0_10] : memref<1x128xf32, #tpu.memory_space<vmem>>, vector<1x128xf32>
    %11 = vector.broadcast %10 : vector<1x128xf32> to vector<8x128xf32>
    %12 = arith.addf %9, %11 : vector<8x128xf32>
    %cst_11 = arith.constant 0.000000e+00 : f32
    %13 = vector.broadcast %cst_11 : f32 to vector<8x128xf32>
    %14 = arith.maximumf %12, %13 : vector<8x128xf32>
    %c0_12 = arith.constant 0 : index
    %c0_13 = arith.constant 0 : index
    %15 = vector.load %arg6[%c0_12, %c0_13] : memref<8x128xf32, #tpu.memory_space<vmem>>, vector<8x128xf32>
    tpu.vector_store %arg6[%c0_12, %c0_13], %14 {strides = array<i32>} : memref<8x128xf32, #tpu.memory_space<vmem>>, vector<8x128xf32>,
    return
  }
  func.func @transform_0(%arg0: i32) -> (i32, i32) {
    %c0_i32 = arith.constant 0 : i32
    %c0_i32_0 = arith.constant 0 : i32
    return %arg0, %c0_i32 : i32, i32
  }
  func.func @transform_1(%arg0: i32) -> (i32, i32) {
    %c0_i32 = arith.constant 0 : i32
    %c0_i32_0 = arith.constant 0 : i32
    %c0_i32_1 = arith.constant 0 : i32
    return %c0_i32, %c0_i32_0 : i32, i32
  }
  func.func @transform_2(%arg0: i32) -> (i32, i32) {
    %c0_i32 = arith.constant 0 : i32
    %c0_i32_0 = arith.constant 0 : i32
    %c0_i32_1 = arith.constant 0 : i32
    return %c0_i32, %c0_i32_0 : i32, i32
  }
  func.func @transform_3(%arg0: i32) -> (i32, i32) {
    %c0_i32 = arith.constant 0 : i32
    %c0_i32_0 = arith.constant 0 : i32
    %c0_i32_1 = arith.constant 0 : i32
    return %c0_i32, %c0_i32_0 : i32, i32
  }
  func.func @transform_4(%arg0: i32) -> (i32, i32) {
    %c0_i32 = arith.constant 0 : i32
    %c0_i32_0 = arith.constant 0 : i32
    %c0_i32_1 = arith.constant 0 : i32
    return %c0_i32, %c0_i32_0 : i32, i32
  }
  func.func @transform_5(%arg0: i32) -> (i32, i32) {
    %c0_i32 = arith.constant 0 : i32
    %c0_i32_0 = arith.constant 0 : i32
    return %arg0, %c0_i32 : i32, i32
  }
}

</mosaic_0001>

<bundles_post_ra>
// kernel: tpu_custom_call.1
= control target key start
LH: loop header
LB: loop body
LE: loop exit
PB: predicated region body
PF: predicated region fallthrough
CT: control target
= control target key end

     0   :  { %vm31_vm0 = vcmask 261120   ;;  %v382_v1 = vmov 0.0   ;;  %vm383_vm1 = vmmov 0   ;;  %vm135_vm2 = vcmask 130048   ;;  %s501_s0 = inlined_call_operand.vmem [shape: f32[8,32], index: 0, kind: input, shape index: {}]   ;;  %s502_s1 = inlined_call_operand.vmem [shape: f32[16,32], index: 1, kind: input, shape index: {}]   ;;  %s503_s2 = inlined_call_operand.vmem [shape: f32[1,16], index: 2, kind: input, shape index: {}]   ;;  %s504_s3 = inlined_call_operand.vmem [shape: f32[128,16], index: 3, kind: input, shape index: {}]   ;;  %s505_s4 = inlined_call_operand.vmem [shape: f32[1,128], index: 4, kind: input, shape index: {}]   ;;  %s506_s5 = inlined_call_operand.hbm [shape: f32[8,128], index: 5, kind: output, shape index: {}]  }
   0x1   :  { %v23_v0 = vld [vmem:[%s502_s1 + $0x8] sm:$0xff]  ;;  %315 = vmatprep.subr.mxu0 %v382_v1  ;;  %319 = vmatprep.mubr.msk.f32.mxu0 %vm383_vm1, %v382_v1  ;;  %v127_v2 = vld [vmem:[%s504_s3 + $0x78] sm:$0xff]  ;;  %v22_v3 = vld [vmem:[%s502_s1] sm:$0xff] }
   0x2   :  { %316 = vmatpush3.xpose.msk.msra.mxu0 %vm31_vm0, %v23_v0  ;;  %322 = vmatprep.subr.mxu1 %v382_v1  ;;  %v126_v4 = vld [vmem:[%s504_s3 + $0x70] sm:$0xff]  ;;  %v21_v5 = vld [vmem:[%s501_s0] sm:$0xff] }
   0x3   :  { %317 = vmatprep.subr.mxu0 %v382_v1  ;;  %323 = vmatpush3.xpose.msk.msra.mxu1 %vm135_vm2, %v127_v2 }
   0x4   :  { %324 = vmatprep.subr.mxu1 %v382_v1  ;;  %354 = vmatprep.mubr.msk.f32.mxu1 %vm383_vm1, %v382_v1 }
   0x6   :  { %318 = vmatpush3.xpose.msk.msra.mxu0 %vm31_vm0, %v22_v3 }
   0x7   :  { %10 = vsyncpa [#allocation3], 0  ;;  %325 = vmatpush3.xpose.msk.msra.mxu1 %vm135_vm2, %v126_v4  ;;  %v125_v6 = vld [vmem:[%s504_s3 + $0x68] sm:$0xff]  ;;  %v124_v7 = vld [vmem:[%s504_s3 + $0x60] sm:$0xff]  ;;  %s384_s6 = smov [#allocation2]  }
   0x8   :  { %326 = vmatprep.subr.mxu1 %v382_v1  ;;  %v123_v8 = vld [vmem:[%s504_s3 + $0x58] sm:$0xff]  ;;  %v122_v9 = vld [vmem:[%s504_s3 + $0x50] sm:$0xff]  ;;  %v121_v10 = vld [vmem:[%s504_s3 + $0x48] sm:$0xff]  ;;  %s265_s7 = sshll.u32 %s384_s6, 4  ;;  %s266_s7 = int_to_ptr.vmem [resolvable:$true] %s265_s7 }
   0x9   :  { %320 = vmatmul.mubr.msk.f32.vlgmr.msra.gmra.mxu0 %vm31_vm0, %v21_v5  ;;  %v120_v11 = vld [vmem:[%s504_s3 + $0x40] sm:$0xff]  ;;  %v119_v12 = vld [vmem:[%s504_s3 + $0x38] sm:$0xff]  ;;  %v118_v13 = vld [vmem:[%s504_s3 + $0x30] sm:$0xff]  ;;  %p365_p1 = scmp.lt.s32.totalorder %s266_s7, %s266_s7 }
   0xa   :  { %v117_v14 = vld [vmem:[%s504_s3 + $0x28] sm:$0xff]  ;;  %v116_v15 = vld [vmem:[%s504_s3 + $0x20] sm:$0xff]  ;;  %v115_v16 = vld [vmem:[%s504_s3 + $0x18] sm:$0xff] }
   0xb   :  { %327 = vmatpush3.xpose.msk.msra.mxu1 %vm135_vm2, %v125_v6  ;;  %v114_v17 = vld [vmem:[%s504_s3 + $0x10] sm:$0xff]  ;;  %v113_v18 = vld [vmem:[%s504_s3 + $0x8] sm:$0xff]  ;;  %v112_v19 = vld [vmem:[%s504_s3] sm:$0xff]  ;;  %s360_s3 = scalar_lea.vmem %s266_s7, 128 }
   0xc   :  { %328 = vmatprep.subr.mxu1 %v382_v1  ;;  %v273_v20 = vld [vmem:[%s503_s2] ss:$0 sm:$0xff]  ;;  %p361_p0 = scmp.ne.s32.totalorder %s266_s7, %s360_s3  ;;  %p366_p2 = scmp.lt.s32.totalorder %s360_s3, %s360_s3 }
   0xd   :  { %v277_v25 = vld [vmem:[%s505_s4] ss:$0 sm:$0xff] }
   0xe   :  { %p367_p3 = por %p366_p2, %p365_p1 }
   0xf   :  { %329 = vmatpush3.xpose.msk.msra.mxu1 %vm135_vm2, %v124_v7 }
  0x10   :  { %330 = vmatprep.subr.mxu1 %v382_v1  ;;  %p368_p4 = pnand %p367_p3, %p361_p0 }
  0x13   :  { %331 = vmatpush3.xpose.msk.msra.mxu1 %vm135_vm2, %v123_v8 }
  0x14   :  { %332 = vmatprep.subr.mxu1 %v382_v1 }
  0x17   :  { %333 = vmatpush3.xpose.msk.msra.mxu1 %vm135_vm2, %v122_v9 }
  0x18   :  { %334 = vmatprep.subr.mxu1 %v382_v1 }
  0x1b   :  { %335 = vmatpush3.xpose.msk.msra.mxu1 %vm135_vm2, %v121_v10 }
  0x1c   :  { %336 = vmatprep.subr.mxu1 %v382_v1 }
  0x1f   :  { %337 = vmatpush3.xpose.msk.msra.mxu1 %vm135_vm2, %v120_v11 }
  0x20   :  { %338 = vmatprep.subr.mxu1 %v382_v1 }
  0x23   :  { %339 = vmatpush3.xpose.msk.msra.mxu1 %vm135_vm2, %v119_v12 }
  0x24   :  { %340 = vmatprep.subr.mxu1 %v382_v1 }
  0x27   :  { %341 = vmatpush3.xpose.msk.msra.mxu1 %vm135_vm2, %v118_v13 }
  0x28   :  { %342 = vmatprep.subr.mxu1 %v382_v1 }
  0x2b   :  { %343 = vmatpush3.xpose.msk.msra.mxu1 %vm135_vm2, %v117_v14 }
  0x2c   :  { %344 = vmatprep.subr.mxu1 %v382_v1 }
  0x2f   :  { %345 = vmatpush3.xpose.msk.msra.mxu1 %vm135_vm2, %v116_v15 }
  0x30   :  { %346 = vmatprep.subr.mxu1 %v382_v1 }
  0x33   :  { %347 = vmatpush3.xpose.msk.msra.mxu1 %vm135_vm2, %v115_v16 }
  0x34   :  { %348 = vmatprep.subr.mxu1 %v382_v1 }
  0x37   :  { %349 = vmatpush3.xpose.msk.msra.mxu1 %vm135_vm2, %v114_v17 }
  0x38   :  { %350 = vmatprep.subr.mxu1 %v382_v1 }
  0x3b   :  { %351 = vmatpush3.xpose.msk.msra.mxu1 %vm135_vm2, %v113_v18 }
  0x3c   :  { %352 = vmatprep.subr.mxu1 %v382_v1 }
  0x3f   :  { %353 = vmatpush3.xpose.msk.msra.mxu1 %vm135_vm2, %v112_v19 }
  0xc9   :  { %v107_v21 = vpop.f32.mrf.mxu0 }
  0xca   :  { %v108_v22 = vadd.f32 %v273_v20, %v107_v21 }
  0xcb   :  { %v321_v23 = vpop.f32.mrf.mxu0 }
  0xcc   :  { %v111_v24 = vmax.f32 %v108_v22, 0.0 }
  0xce   :  { %355 = vmatmul.mubr.msk.f32.vlgmr.msra.gmra.mxu1 %vm135_vm2, %v111_v24 }
 0x18e   :  { %v253_v26 = vpop.f32.mrf.mxu1 }
 0x18f   :  { %v254_v27 = vadd.f32 %v277_v25, %v253_v26 }
 0x190   :  { %v356_v28 = vpop.f32.mrf.mxu1 }
 0x191   :  { %v257_v29 = vmax.f32 %v254_v27, 0.0 }
 0x193   :  { %258 = vst [vmem:[#allocation2] sm:$0xff] %v257_v29 }
 0x194   :  { %371 = shalt.err (!%p368_p4)
}
 0x195   :  { %268 = dma.vmem_to_hbm [thread:$0]  %s266_s7, 128, %s506_s5, [#allocation3]  }
 0x196   :  { %380 = dma.done.wait [#allocation3], 128  }
 0x197   :  { %381 = vsyncadd [#allocation3], 4294967168 }
 0x198   :  { %272 = vsyncpa [#allocation3], 1 }

</bundles_post_ra>
